<compile_context>
chip_gen: v6e
topology: v6e:2x2x1
jax: 0.10.0
libtpu: 0.0.40
codegen_flags: <defaults>
</compile_context>

<pallas_src>
import functools

import jax
import jax.numpy as jnp
from jax.experimental import pallas as pl
from jax.experimental.pallas import tpu as pltpu

KH = KW = 3   # kernel_size = 3
OC_PAD = 8    # pad 6 output channels to a full 8-sublane tile


def conv2d_kernel(x_ref, w_ref, b_ref, o_ref, *, width, hw):
    """x_ref: (C, N*H*W)   w_ref: (C*KH*KW, OC_PAD, 1)   b_ref: (OC_PAD, 1)
    o_ref: (N, OC_PAD, H*W) -- conv evaluated over the full H*W grid; the
    caller takes the VALID (OH, OW) crop with a free reshape + slice."""
    C, NHW = x_ref.shape
    N, OC, _ = o_ref.shape

    # Bias-initialized batched accumulator: (8, N*H*W) = 4 f32 vregs at
    # N=2, HW=256 -- well inside the 64-vreg register file.
    acc = jnp.zeros((OC, NHW), jnp.float32) + b_ref[...]

    for c in range(C):
        # One row per input channel covering ALL batch elements (on lanes).
        row = x_ref[c:c + 1, :]                         # (1, N*H*W)
        for kh in range(KH):
            for kw in range(KW):
                s = kh * width + kw                     # flat tap offset
                if s == 0:
                    shifted = row
                else:
                    # shifted[q] = x[(q + s) mod N*H*W].  Wrapped lanes only
                    # land on pixels with h >= OH or w >= OW, all cropped by
                    # the wrapper (see assert in conv2d_pallas).
                    shifted = pltpu.roll(row, NHW - s, 1)
                w_tap = w_ref[(c * KH + kh) * KW + kw]  # (OC_PAD, 1)
                # (1, N*HW) * (OC_PAD, 1) -> (OC_PAD, N*HW): one broadcast
                # FMA per tap for every batch element at once.
                acc = acc + shifted * w_tap

    # Lane-dense, unmasked (8, 256) stores per batch element (256 % 128 == 0).
    for n in range(N):
        o_ref[n] = acc[:, n * hw:(n + 1) * hw].astype(o_ref.dtype)


def conv2d_pallas(x_nchw, w_oihw, b):
    """PyTorch-semantics Conv2d forward: NCHW input, OIHW weight, bias (OC,)."""
    N, C, H, W = x_nchw.shape
    OC = w_oihw.shape[0]
    OH, OW = H - KH + 1, W - KW + 1
    HW = H * W

    # Cyclic-roll correctness guard: the furthest tap read from any KEPT
    # output pixel is (OH-1)*W + (OW-1) + (KH-1)*W + (KW-1); it must stay
    # inside the same batch element's H*W block so the roll wraparound never
    # contaminates a kept pixel.  Holds for any VALID, stride-1 conv; breaks
    # (by design of this assert) if padding/stride/kernel ever change.
    assert (OH - 1) * W + (OW - 1) + (KH - 1) * W + (KW - 1) < HW

    # Fold the batch onto the lane axis: (N, C, H, W) -> (C, N*H*W).
    # Tiny one-time re-layout (~6 KB at these shapes).
    x_flat = jnp.transpose(x_nchw.reshape(N, C, HW), (1, 0, 2)).reshape(C, N * HW)

    # Weight/bias re-layout + OC padding to a full 8-sublane tile
    # (54 -> 72 floats; the zero rows contribute nothing and are sliced away).
    w_taps = jnp.transpose(w_oihw, (1, 2, 3, 0)).reshape(C * KH * KW, OC)
    w_taps = jnp.pad(w_taps, ((0, 0), (0, OC_PAD - OC))).reshape(C * KH * KW, OC_PAD, 1)
    b_col = jnp.pad(b, (0, OC_PAD - OC)).reshape(OC_PAD, 1)

    flops = 2 * N * OH * OW * OC * C * KH * KW
    bytes_accessed = 4 * (x_flat.size + w_taps.size + b_col.size + N * OC_PAD * HW)

    out_full = pl.pallas_call(
        functools.partial(conv2d_kernel, width=W, hw=HW),
        out_shape=jax.ShapeDtypeStruct((N, OC_PAD, HW), x_nchw.dtype),
        # Everything fits trivially in VMEM -> whole-array blocks, no grid.
        in_specs=[pl.BlockSpec(memory_space=pltpu.MemorySpace.VMEM)] * 3,
        out_specs=pl.BlockSpec(memory_space=pltpu.MemorySpace.VMEM),
        cost_estimate=pl.CostEstimate(
            flops=flops, transcendentals=0, bytes_accessed=bytes_accessed),
    )(x_flat, w_taps, b_col)

    # (N, OC_PAD, H*W) -> (N, OC_PAD, H, W) is free; drop the padded channels
    # and crop to the VALID-conv window.
    return out_full.reshape(N, OC_PAD, H, W)[:, :OC, :OH, :OW]


if __name__ == "__main__":
    key = jax.random.PRNGKey(0)
    kx, kw, kb = jax.random.split(key, 3)

    # Deterministic parameter init mimicking nn.Conv2d's default
    # (uniform in +-1/sqrt(fan_in)), fan_in = 3*3*3 = 27.
    IC, OC = 3, 6
    bound = 1.0 / jnp.sqrt(jnp.float32(IC * KH * KW))
    w = jax.random.uniform(kw, (OC, IC, KH, KW), jnp.float32, -bound, bound)
    b = jax.random.uniform(kb, (OC,), jnp.float32, -bound, bound)

    # Small CIFAR-like input: batch=2, channels=3, spatial=16 (NCHW).
    x = jax.random.normal(kx, (2, 3, 16, 16), jnp.float32)

    out = conv2d_pallas(x, w, b)
    out = jax.block_until_ready(out)

    # Reference check against XLA's conv.
    ref = jax.lax.conv_general_dilated(
        x, w, window_strides=(1, 1), padding="VALID",
        dimension_numbers=("NCHW", "OIHW", "NCHW")) + b.reshape(1, OC, 1, 1)
    assert out.shape == (2, 6, 14, 14)
    assert jnp.allclose(out, ref, atol=1e-5, rtol=1e-5)

    print("KERNEL_OK")
</pallas_src>

<mosaic_0001>
module attributes {stable_mosaic.version = 11 : i64} {
  func.func @conv2d_kernel(%arg0: memref<3x512xf32, #tpu.memory_space<vmem>>, %arg1: memref<27x8x1xf32, #tpu.memory_space<vmem>>, %arg2: memref<8x1xf32, #tpu.memory_space<vmem>>, %arg3: memref<2x8x256xf32, #tpu.memory_space<vmem>>) attributes {dimension_semantics = [], scalar_prefetch = 0 : i64, scratch_operands = 0 : i64, tpu.core_type = #tpu.core_type<tc>} {
    %cst = arith.constant 0.000000e+00 : f32
    %0 = vector.broadcast %cst : f32 to vector<8x512xf32>
    %c0 = arith.constant 0 : index
    %c0_0 = arith.constant 0 : index
    %1 = vector.load %arg2[%c0, %c0_0] : memref<8x1xf32, #tpu.memory_space<vmem>>, vector<8x1xf32>
    %2 = vector.broadcast %1 : vector<8x1xf32> to vector<8x512xf32>
    %3 = arith.addf %0, %2 : vector<8x512xf32>
    %c0_1 = arith.constant 0 : index
    %c0_2 = arith.constant 0 : index
    %4 = vector.load %arg0[%c0_1, %c0_2] : memref<3x512xf32, #tpu.memory_space<vmem>>, vector<1x512xf32>
    %c0_3 = arith.constant 0 : index
    %c0_4 = arith.constant 0 : index
    %c0_5 = arith.constant 0 : index
    %5 = vector.load %arg1[%c0_3, %c0_4, %c0_5] : memref<27x8x1xf32, #tpu.memory_space<vmem>>, vector<1x8x1xf32>
    %6 = vector.shape_cast %5 : vector<1x8x1xf32> to vector<8x1xf32>
    %7 = vector.broadcast %4 : vector<1x512xf32> to vector<8x512xf32>
    %8 = vector.broadcast %6 : vector<8x1xf32> to vector<8x512xf32>
    %9 = arith.mulf %7, %8 : vector<8x512xf32>
    %10 = arith.addf %3, %9 : vector<8x512xf32>
    %c511_i32 = arith.constant 511 : i32
    %11 = tpu.dynamic_rotate %4 by %c511_i32 dim 1 : vector<1x512xf32>, i32 -> vector<1x512xf32>
    %c1 = arith.constant 1 : index
    %c0_6 = arith.constant 0 : index
    %c0_7 = arith.constant 0 : index
    %12 = vector.load %arg1[%c1, %c0_6, %c0_7] : memref<27x8x1xf32, #tpu.memory_space<vmem>>, vector<1x8x1xf32>
    %13 = vector.shape_cast %12 : vector<1x8x1xf32> to vector<8x1xf32>
    %14 = vector.broadcast %11 : vector<1x512xf32> to vector<8x512xf32>
    %15 = vector.broadcast %13 : vector<8x1xf32> to vector<8x512xf32>
    %16 = arith.mulf %14, %15 : vector<8x512xf32>
    %17 = arith.addf %10, %16 : vector<8x512xf32>
    %c510_i32 = arith.constant 510 : i32
    %18 = tpu.dynamic_rotate %4 by %c510_i32 dim 1 : vector<1x512xf32>, i32 -> vector<1x512xf32>
    %c2 = arith.constant 2 : index
    %c0_8 = arith.constant 0 : index
    %c0_9 = arith.constant 0 : index
    %19 = vector.load %arg1[%c2, %c0_8, %c0_9] : memref<27x8x1xf32, #tpu.memory_space<vmem>>, vector<1x8x1xf32>
    %20 = vector.shape_cast %19 : vector<1x8x1xf32> to vector<8x1xf32>
    %21 = vector.broadcast %18 : vector<1x512xf32> to vector<8x512xf32>
    %22 = vector.broadcast %20 : vector<8x1xf32> to vector<8x512xf32>
    %23 = arith.mulf %21, %22 : vector<8x512xf32>
    %24 = arith.addf %17, %23 : vector<8x512xf32>
    %c496_i32 = arith.constant 496 : i32
    %25 = tpu.dynamic_rotate %4 by %c496_i32 dim 1 : vector<1x512xf32>, i32 -> vector<1x512xf32>
    %c3 = arith.constant 3 : index
    %c0_10 = arith.constant 0 : index
    %c0_11 = arith.constant 0 : index
    %26 = vector.load %arg1[%c3, %c0_10, %c0_11] : memref<27x8x1xf32, #tpu.memory_space<vmem>>, vector<1x8x1xf32>
    %27 = vector.shape_cast %26 : vector<1x8x1xf32> to vector<8x1xf32>
    %28 = vector.broadcast %25 : vector<1x512xf32> to vector<8x512xf32>
    %29 = vector.broadcast %27 : vector<8x1xf32> to vector<8x512xf32>
    %30 = arith.mulf %28, %29 : vector<8x512xf32>
    %31 = arith.addf %24, %30 : vector<8x512xf32>
    %c495_i32 = arith.constant 495 : i32
    %32 = tpu.dynamic_rotate %4 by %c495_i32 dim 1 : vector<1x512xf32>, i32 -> vector<1x512xf32>
    %c4 = arith.constant 4 : index
    %c0_12 = arith.constant 0 : index
    %c0_13 = arith.constant 0 : index
    %33 = vector.load %arg1[%c4, %c0_12, %c0_13] : memref<27x8x1xf32, #tpu.memory_space<vmem>>, vector<1x8x1xf32>
    %34 = vector.shape_cast %33 : vector<1x8x1xf32> to vector<8x1xf32>
    %35 = vector.broadcast %32 : vector<1x512xf32> to vector<8x512xf32>
    %36 = vector.broadcast %34 : vector<8x1xf32> to vector<8x512xf32>
    %37 = arith.mulf %35, %36 : vector<8x512xf32>
    %38 = arith.addf %31, %37 : vector<8x512xf32>
    %c494_i32 = arith.constant 494 : i32
    %39 = tpu.dynamic_rotate %4 by %c494_i32 dim 1 : vector<1x512xf32>, i32 -> vector<1x512xf32>
    %c5 = arith.constant 5 : index
    %c0_14 = arith.constant 0 : index
    %c0_15 = arith.constant 0 : index
    %40 = vector.load %arg1[%c5, %c0_14, %c0_15] : memref<27x8x1xf32, #tpu.memory_space<vmem>>, vector<1x8x1xf32>
    %41 = vector.shape_cast %40 : vector<1x8x1xf32> to vector<8x1xf32>
    %42 = vector.broadcast %39 : vector<1x512xf32> to vector<8x512xf32>
    %43 = vector.broadcast %41 : vector<8x1xf32> to vector<8x512xf32>
    %44 = arith.mulf %42, %43 : vector<8x512xf32>
    %45 = arith.addf %38, %44 : vector<8x512xf32>
    %c480_i32 = arith.constant 480 : i32
    %46 = tpu.dynamic_rotate %4 by %c480_i32 dim 1 : vector<1x512xf32>, i32 -> vector<1x512xf32>
    %c6 = arith.constant 6 : index
    %c0_16 = arith.constant 0 : index
    %c0_17 = arith.constant 0 : index
    %47 = vector.load %arg1[%c6, %c0_16, %c0_17] : memref<27x8x1xf32, #tpu.memory_space<vmem>>, vector<1x8x1xf32>
    %48 = vector.shape_cast %47 : vector<1x8x1xf32> to vector<8x1xf32>
    %49 = vector.broadcast %46 : vector<1x512xf32> to vector<8x512xf32>
    %50 = vector.broadcast %48 : vector<8x1xf32> to vector<8x512xf32>
    %51 = arith.mulf %49, %50 : vector<8x512xf32>
    %52 = arith.addf %45, %51 : vector<8x512xf32>
    %c479_i32 = arith.constant 479 : i32
    %53 = tpu.dynamic_rotate %4 by %c479_i32 dim 1 : vector<1x512xf32>, i32 -> vector<1x512xf32>
    %c7 = arith.constant 7 : index
    %c0_18 = arith.constant 0 : index
    %c0_19 = arith.constant 0 : index
    %54 = vector.load %arg1[%c7, %c0_18, %c0_19] : memref<27x8x1xf32, #tpu.memory_space<vmem>>, vector<1x8x1xf32>
    %55 = vector.shape_cast %54 : vector<1x8x1xf32> to vector<8x1xf32>
    %56 = vector.broadcast %53 : vector<1x512xf32> to vector<8x512xf32>
    %57 = vector.broadcast %55 : vector<8x1xf32> to vector<8x512xf32>
    %58 = arith.mulf %56, %57 : vector<8x512xf32>
    %59 = arith.addf %52, %58 : vector<8x512xf32>
    %c478_i32 = arith.constant 478 : i32
    %60 = tpu.dynamic_rotate %4 by %c478_i32 dim 1 : vector<1x512xf32>, i32 -> vector<1x512xf32>
    %c8 = arith.constant 8 : index
    %c0_20 = arith.constant 0 : index
    %c0_21 = arith.constant 0 : index
    %61 = vector.load %arg1[%c8, %c0_20, %c0_21] : memref<27x8x1xf32, #tpu.memory_space<vmem>>, vector<1x8x1xf32>
    %62 = vector.shape_cast %61 : vector<1x8x1xf32> to vector<8x1xf32>
    %63 = vector.broadcast %60 : vector<1x512xf32> to vector<8x512xf32>
    %64 = vector.broadcast %62 : vector<8x1xf32> to vector<8x512xf32>
    %65 = arith.mulf %63, %64 : vector<8x512xf32>
    %66 = arith.addf %59, %65 : vector<8x512xf32>
    %c1_22 = arith.constant 1 : index
    %c0_23 = arith.constant 0 : index
    %67 = vector.load %arg0[%c1_22, %c0_23] : memref<3x512xf32, #tpu.memory_space<vmem>>, vector<1x512xf32>
    %c9 = arith.constant 9 : index
    %c0_24 = arith.constant 0 : index
    %c0_25 = arith.constant 0 : index
    %68 = vector.load %arg1[%c9, %c0_24, %c0_25] : memref<27x8x1xf32, #tpu.memory_space<vmem>>, vector<1x8x1xf32>
    %69 = vector.shape_cast %68 : vector<1x8x1xf32> to vector<8x1xf32>
    %70 = vector.broadcast %67 : vector<1x512xf32> to vector<8x512xf32>
    %71 = vector.broadcast %69 : vector<8x1xf32> to vector<8x512xf32>
    %72 = arith.mulf %70, %71 : vector<8x512xf32>
    %73 = arith.addf %66, %72 : vector<8x512xf32>
    %c511_i32_26 = arith.constant 511 : i32
    %74 = tpu.dynamic_rotate %67 by %c511_i32_26 dim 1 : vector<1x512xf32>, i32 -> vector<1x512xf32>
    %c10 = arith.constant 10 : index
    %c0_27 = arith.constant 0 : index
    %c0_28 = arith.constant 0 : index
    %75 = vector.load %arg1[%c10, %c0_27, %c0_28] : memref<27x8x1xf32, #tpu.memory_space<vmem>>, vector<1x8x1xf32>
    %76 = vector.shape_cast %75 : vector<1x8x1xf32> to vector<8x1xf32>
    %77 = vector.broadcast %74 : vector<1x512xf32> to vector<8x512xf32>
    %78 = vector.broadcast %76 : vector<8x1xf32> to vector<8x512xf32>
    %79 = arith.mulf %77, %78 : vector<8x512xf32>
    %80 = arith.addf %73, %79 : vector<8x512xf32>
    %c510_i32_29 = arith.constant 510 : i32
    %81 = tpu.dynamic_rotate %67 by %c510_i32_29 dim 1 : vector<1x512xf32>, i32 -> vector<1x512xf32>
    %c11 = arith.constant 11 : index
    %c0_30 = arith.constant 0 : index
    %c0_31 = arith.constant 0 : index
    %82 = vector.load %arg1[%c11, %c0_30, %c0_31] : memref<27x8x1xf32, #tpu.memory_space<vmem>>, vector<1x8x1xf32>
    %83 = vector.shape_cast %82 : vector<1x8x1xf32> to vector<8x1xf32>
    %84 = vector.broadcast %81 : vector<1x512xf32> to vector<8x512xf32>
    %85 = vector.broadcast %83 : vector<8x1xf32> to vector<8x512xf32>
    %86 = arith.mulf %84, %85 : vector<8x512xf32>
    %87 = arith.addf %80, %86 : vector<8x512xf32>
    %c496_i32_32 = arith.constant 496 : i32
    %88 = tpu.dynamic_rotate %67 by %c496_i32_32 dim 1 : vector<1x512xf32>, i32 -> vector<1x512xf32>
    %c12 = arith.constant 12 : index
    %c0_33 = arith.constant 0 : index
    %c0_34 = arith.constant 0 : index
    %89 = vector.load %arg1[%c12, %c0_33, %c0_34] : memref<27x8x1xf32, #tpu.memory_space<vmem>>, vector<1x8x1xf32>
    %90 = vector.shape_cast %89 : vector<1x8x1xf32> to vector<8x1xf32>
    %91 = vector.broadcast %88 : vector<1x512xf32> to vector<8x512xf32>
    %92 = vector.broadcast %90 : vector<8x1xf32> to vector<8x512xf32>
    %93 = arith.mulf %91, %92 : vector<8x512xf32>
    %94 = arith.addf %87, %93 : vector<8x512xf32>
    %c495_i32_35 = arith.constant 495 : i32
    %95 = tpu.dynamic_rotate %67 by %c495_i32_35 dim 1 : vector<1x512xf32>, i32 -> vector<1x512xf32>
    %c13 = arith.constant 13 : index
    %c0_36 = arith.constant 0 : index
    %c0_37 = arith.constant 0 : index
    %96 = vector.load %arg1[%c13, %c0_36, %c0_37] : memref<27x8x1xf32, #tpu.memory_space<vmem>>, vector<1x8x1xf32>
    %97 = vector.shape_cast %96 : vector<1x8x1xf32> to vector<8x1xf32>
    %98 = vector.broadcast %95 : vector<1x512xf32> to vector<8x512xf32>
    %99 = vector.broadcast %97 : vector<8x1xf32> to vector<8x512xf32>
    %100 = arith.mulf %98, %99 : vector<8x512xf32>
    %101 = arith.addf %94, %100 : vector<8x512xf32>
    %c494_i32_38 = arith.constant 494 : i32
    %102 = tpu.dynamic_rotate %67 by %c494_i32_38 dim 1 : vector<1x512xf32>, i32 -> vector<1x512xf32>
    %c14 = arith.constant 14 : index
    %c0_39 = arith.constant 0 : index
    %c0_40 = arith.constant 0 : index
    %103 = vector.load %arg1[%c14, %c0_39, %c0_40] : memref<27x8x1xf32, #tpu.memory_space<vmem>>, vector<1x8x1xf32>
    %104 = vector.shape_cast %103 : vector<1x8x1xf32> to vector<8x1xf32>
    %105 = vector.broadcast %102 : vector<1x512xf32> to vector<8x512xf32>
    %106 = vector.broadcast %104 : vector<8x1xf32> to vector<8x512xf32>
    %107 = arith.mulf %105, %106 : vector<8x512xf32>
    %108 = arith.addf %101, %107 : vector<8x512xf32>
    %c480_i32_41 = arith.constant 480 : i32
    %109 = tpu.dynamic_rotate %67 by %c480_i32_41 dim 1 : vector<1x512xf32>, i32 -> vector<1x512xf32>
    %c15 = arith.constant 15 : index
    %c0_42 = arith.constant 0 : index
    %c0_43 = arith.constant 0 : index
    %110 = vector.load %arg1[%c15, %c0_42, %c0_43] : memref<27x8x1xf32, #tpu.memory_space<vmem>>, vector<1x8x1xf32>
    %111 = vector.shape_cast %110 : vector<1x8x1xf32> to vector<8x1xf32>
    %112 = vector.broadcast %109 : vector<1x512xf32> to vector<8x512xf32>
    %113 = vector.broadcast %111 : vector<8x1xf32> to vector<8x512xf32>
    %114 = arith.mulf %112, %113 : vector<8x512xf32>
    %115 = arith.addf %108, %114 : vector<8x512xf32>
    %c479_i32_44 = arith.constant 479 : i32
    %116 = tpu.dynamic_rotate %67 by %c479_i32_44 dim 1 : vector<1x512xf32>, i32 -> vector<1x512xf32>
    %c16 = arith.constant 16 : index
    %c0_45 = arith.constant 0 : index
    %c0_46 = arith.constant 0 : index
    %117 = vector.load %arg1[%c16, %c0_45, %c0_46] : memref<27x8x1xf32, #tpu.memory_space<vmem>>, vector<1x8x1xf32>
    %118 = vector.shape_cast %117 : vector<1x8x1xf32> to vector<8x1xf32>
    %119 = vector.broadcast %116 : vector<1x512xf32> to vector<8x512xf32>
    %120 = vector.broadcast %118 : vector<8x1xf32> to vector<8x512xf32>
    %121 = arith.mulf %119, %120 : vector<8x512xf32>
    %122 = arith.addf %115, %121 : vector<8x512xf32>
    %c478_i32_47 = arith.constant 478 : i32
    %123 = tpu.dynamic_rotate %67 by %c478_i32_47 dim 1 : vector<1x512xf32>, i32 -> vector<1x512xf32>
    %c17 = arith.constant 17 : index
    %c0_48 = arith.constant 0 : index
    %c0_49 = arith.constant 0 : index
    %124 = vector.load %arg1[%c17, %c0_48, %c0_49] : memref<27x8x1xf32, #tpu.memory_space<vmem>>, vector<1x8x1xf32>
    %125 = vector.shape_cast %124 : vector<1x8x1xf32> to vector<8x1xf32>
    %126 = vector.broadcast %123 : vector<1x512xf32> to vector<8x512xf32>
    %127 = vector.broadcast %125 : vector<8x1xf32> to vector<8x512xf32>
    %128 = arith.mulf %126, %127 : vector<8x512xf32>
    %129 = arith.addf %122, %128 : vector<8x512xf32>
    %c2_50 = arith.constant 2 : index
    %c0_51 = arith.constant 0 : index
    %130 = vector.load %arg0[%c2_50, %c0_51] : memref<3x512xf32, #tpu.memory_space<vmem>>, vector<1x512xf32>
    %c18 = arith.constant 18 : index
    %c0_52 = arith.constant 0 : index
    %c0_53 = arith.constant 0 : index
    %131 = vector.load %arg1[%c18, %c0_52, %c0_53] : memref<27x8x1xf32, #tpu.memory_space<vmem>>, vector<1x8x1xf32>
    %132 = vector.shape_cast %131 : vector<1x8x1xf32> to vector<8x1xf32>
    %133 = vector.broadcast %130 : vector<1x512xf32> to vector<8x512xf32>
    %134 = vector.broadcast %132 : vector<8x1xf32> to vector<8x512xf32>
    %135 = arith.mulf %133, %134 : vector<8x512xf32>
    %136 = arith.addf %129, %135 : vector<8x512xf32>
    %c511_i32_54 = arith.constant 511 : i32
    %137 = tpu.dynamic_rotate %130 by %c511_i32_54 dim 1 : vector<1x512xf32>, i32 -> vector<1x512xf32>
    %c19 = arith.constant 19 : index
    %c0_55 = arith.constant 0 : index
    %c0_56 = arith.constant 0 : index
    %138 = vector.load %arg1[%c19, %c0_55, %c0_56] : memref<27x8x1xf32, #tpu.memory_space<vmem>>, vector<1x8x1xf32>
    %139 = vector.shape_cast %138 : vector<1x8x1xf32> to vector<8x1xf32>
    %140 = vector.broadcast %137 : vector<1x512xf32> to vector<8x512xf32>
    %141 = vector.broadcast %139 : vector<8x1xf32> to vector<8x512xf32>
    %142 = arith.mulf %140, %141 : vector<8x512xf32>
    %143 = arith.addf %136, %142 : vector<8x512xf32>
    %c510_i32_57 = arith.constant 510 : i32
    %144 = tpu.dynamic_rotate %130 by %c510_i32_57 dim 1 : vector<1x512xf32>, i32 -> vector<1x512xf32>
    %c20 = arith.constant 20 : index
    %c0_58 = arith.constant 0 : index
    %c0_59 = arith.constant 0 : index
    %145 = vector.load %arg1[%c20, %c0_58, %c0_59] : memref<27x8x1xf32, #tpu.memory_space<vmem>>, vector<1x8x1xf32>
    %146 = vector.shape_cast %145 : vector<1x8x1xf32> to vector<8x1xf32>
    %147 = vector.broadcast %144 : vector<1x512xf32> to vector<8x512xf32>
    %148 = vector.broadcast %146 : vector<8x1xf32> to vector<8x512xf32>
    %149 = arith.mulf %147, %148 : vector<8x512xf32>
    %150 = arith.addf %143, %149 : vector<8x512xf32>
    %c496_i32_60 = arith.constant 496 : i32
    %151 = tpu.dynamic_rotate %130 by %c496_i32_60 dim 1 : vector<1x512xf32>, i32 -> vector<1x512xf32>
    %c21 = arith.constant 21 : index
    %c0_61 = arith.constant 0 : index
    %c0_62 = arith.constant 0 : index
    %152 = vector.load %arg1[%c21, %c0_61, %c0_62] : memref<27x8x1xf32, #tpu.memory_space<vmem>>, vector<1x8x1xf32>
    %153 = vector.shape_cast %152 : vector<1x8x1xf32> to vector<8x1xf32>
    %154 = vector.broadcast %151 : vector<1x512xf32> to vector<8x512xf32>
    %155 = vector.broadcast %153 : vector<8x1xf32> to vector<8x512xf32>
    %156 = arith.mulf %154, %155 : vector<8x512xf32>
    %157 = arith.addf %150, %156 : vector<8x512xf32>
    %c495_i32_63 = arith.constant 495 : i32
    %158 = tpu.dynamic_rotate %130 by %c495_i32_63 dim 1 : vector<1x512xf32>, i32 -> vector<1x512xf32>
    %c22 = arith.constant 22 : index
    %c0_64 = arith.constant 0 : index
    %c0_65 = arith.constant 0 : index
    %159 = vector.load %arg1[%c22, %c0_64, %c0_65] : memref<27x8x1xf32, #tpu.memory_space<vmem>>, vector<1x8x1xf32>
    %160 = vector.shape_cast %159 : vector<1x8x1xf32> to vector<8x1xf32>
    %161 = vector.broadcast %158 : vector<1x512xf32> to vector<8x512xf32>
    %162 = vector.broadcast %160 : vector<8x1xf32> to vector<8x512xf32>
    %163 = arith.mulf %161, %162 : vector<8x512xf32>
    %164 = arith.addf %157, %163 : vector<8x512xf32>
    %c494_i32_66 = arith.constant 494 : i32
    %165 = tpu.dynamic_rotate %130 by %c494_i32_66 dim 1 : vector<1x512xf32>, i32 -> vector<1x512xf32>
    %c23 = arith.constant 23 : index
    %c0_67 = arith.constant 0 : index
    %c0_68 = arith.constant 0 : index
    %166 = vector.load %arg1[%c23, %c0_67, %c0_68] : memref<27x8x1xf32, #tpu.memory_space<vmem>>, vector<1x8x1xf32>
    %167 = vector.shape_cast %166 : vector<1x8x1xf32> to vector<8x1xf32>
    %168 = vector.broadcast %165 : vector<1x512xf32> to vector<8x512xf32>
    %169 = vector.broadcast %167 : vector<8x1xf32> to vector<8x512xf32>
    %170 = arith.mulf %168, %169 : vector<8x512xf32>
    %171 = arith.addf %164, %170 : vector<8x512xf32>
    %c480_i32_69 = arith.constant 480 : i32
    %172 = tpu.dynamic_rotate %130 by %c480_i32_69 dim 1 : vector<1x512xf32>, i32 -> vector<1x512xf32>
    %c24 = arith.constant 24 : index
    %c0_70 = arith.constant 0 : index
    %c0_71 = arith.constant 0 : index
    %173 = vector.load %arg1[%c24, %c0_70, %c0_71] : memref<27x8x1xf32, #tpu.memory_space<vmem>>, vector<1x8x1xf32>
    %174 = vector.shape_cast %173 : vector<1x8x1xf32> to vector<8x1xf32>
    %175 = vector.broadcast %172 : vector<1x512xf32> to vector<8x512xf32>
    %176 = vector.broadcast %174 : vector<8x1xf32> to vector<8x512xf32>
    %177 = arith.mulf %175, %176 : vector<8x512xf32>
    %178 = arith.addf %171, %177 : vector<8x512xf32>
    %c479_i32_72 = arith.constant 479 : i32
    %179 = tpu.dynamic_rotate %130 by %c479_i32_72 dim 1 : vector<1x512xf32>, i32 -> vector<1x512xf32>
    %c25 = arith.constant 25 : index
    %c0_73 = arith.constant 0 : index
    %c0_74 = arith.constant 0 : index
    %180 = vector.load %arg1[%c25, %c0_73, %c0_74] : memref<27x8x1xf32, #tpu.memory_space<vmem>>, vector<1x8x1xf32>
    %181 = vector.shape_cast %180 : vector<1x8x1xf32> to vector<8x1xf32>
    %182 = vector.broadcast %179 : vector<1x512xf32> to vector<8x512xf32>
    %183 = vector.broadcast %181 : vector<8x1xf32> to vector<8x512xf32>
    %184 = arith.mulf %182, %183 : vector<8x512xf32>
    %185 = arith.addf %178, %184 : vector<8x512xf32>
    %c478_i32_75 = arith.constant 478 : i32
    %186 = tpu.dynamic_rotate %130 by %c478_i32_75 dim 1 : vector<1x512xf32>, i32 -> vector<1x512xf32>
    %c26 = arith.constant 26 : index
    %c0_76 = arith.constant 0 : index
    %c0_77 = arith.constant 0 : index
    %187 = vector.load %arg1[%c26, %c0_76, %c0_77] : memref<27x8x1xf32, #tpu.memory_space<vmem>>, vector<1x8x1xf32>
    %188 = vector.shape_cast %187 : vector<1x8x1xf32> to vector<8x1xf32>
    %189 = vector.broadcast %186 : vector<1x512xf32> to vector<8x512xf32>
    %190 = vector.broadcast %188 : vector<8x1xf32> to vector<8x512xf32>
    %191 = arith.mulf %189, %190 : vector<8x512xf32>
    %192 = arith.addf %185, %191 : vector<8x512xf32>
    %193 = vector.extract_strided_slice %192 {offsets = [0, 0], sizes = [8, 256], strides = [1, 1]} : vector<8x512xf32> to vector<8x256xf32>
    %c0_78 = arith.constant 0 : index
    %c0_79 = arith.constant 0 : index
    %c0_80 = arith.constant 0 : index
    %194 = vector.load %arg3[%c0_78, %c0_79, %c0_80] : memref<2x8x256xf32, #tpu.memory_space<vmem>>, vector<1x8x256xf32>
    %195 = vector.shape_cast %194 : vector<1x8x256xf32> to vector<8x256xf32>
    %196 = vector.shape_cast %193 : vector<8x256xf32> to vector<1x8x256xf32>
    tpu.vector_store %arg3[%c0_78, %c0_79, %c0_80], %196 {strides = array<i32>} : memref<2x8x256xf32, #tpu.memory_space<vmem>>, vector<1x8x256xf32>,
    %197 = vector.extract_strided_slice %192 {offsets = [0, 256], sizes = [8, 256], strides = [1, 1]} : vector<8x512xf32> to vector<8x256xf32>
    %c1_81 = arith.constant 1 : index
    %c0_82 = arith.constant 0 : index
    %c0_83 = arith.constant 0 : index
    %198 = vector.load %arg3[%c1_81, %c0_82, %c0_83] : memref<2x8x256xf32, #tpu.memory_space<vmem>>, vector<1x8x256xf32>
    %199 = vector.shape_cast %198 : vector<1x8x256xf32> to vector<8x256xf32>
    %200 = vector.shape_cast %197 : vector<8x256xf32> to vector<1x8x256xf32>
    tpu.vector_store %arg3[%c1_81, %c0_82, %c0_83], %200 {strides = array<i32>} : memref<2x8x256xf32, #tpu.memory_space<vmem>>, vector<1x8x256xf32>,
    return
  }
}

</mosaic_0001>

<bundles_post_ra>
// kernel: tpu_custom_call.1
= control target key start
LH: loop header
LB: loop body
LE: loop exit
PB: predicated region body
PF: predicated region fallthrough
CT: control target
= control target key end

     0   :  { %v25_v1 = vlaneseq  ;;  %v1261_v2 = vmov 0   ;;  %s1973_s0 = inlined_call_operand.vmem [shape: f32[3,512], index: 0, kind: input, shape index: {}]   ;;  %s1974_s1 = inlined_call_operand.vmem [shape: f32[27,8,1], index: 1, kind: input, shape index: {}]   ;;  %s1975_s2 = inlined_call_operand.vmem [shape: f32[8,1], index: 2, kind: input, shape index: {}]   ;;  %s1976_s3 = inlined_call_operand.hbm [shape: f32[2,8,256], index: 3, kind: output, shape index: {}]  }
   0x1   :  { %v15_v0 = vld [vmem:[%s1975_s2] sm:$0xff]  ;;  %1237 = vset.pattern.permute.xlu0 %v1261_v2  ;;  %1238 = vset.pattern.permute.xlu1 %v1261_v2 }
   0x2   :  { %18 = vperm.xlu0 %1237, %v15_v0   ;;  %v26_v3 = vshrl.u32 %v25_v1, 7  ;;  %v23_v4 = vld [vmem:[%s1974_s1] sm:$0xff] }
   0x3   :  { %v22_v5 = vld [vmem:[%s1973_s0] ss:$4 sm:$0xf] }
   0x4   :  { %v1303_v6 = vsub.s32 0, %v26_v3  ;;  %v1305_v7 = vsub.s32 2, %v26_v3  ;;  %v1307_v8 = vsub.s32 1, %v26_v3 }
   0x6   :  { %47 = vperm.xlu0 %1237, %v23_v4   ;;  %v1310_v9 = vrot.slane %v22_v5, %v1303_v6  ;;  %v1313_v10 = vrot.slane %v22_v5, %v1305_v7 }
   0x7   :  { %8 = vsyncpa [#allocation3], 0  ;;  %s1262_s2 = smov 127   ;;  %v1318_v11 = vrot.slane %v22_v5, %v1307_v8  ;;  %v1320_v12 = vsub.s32 3, %v26_v3  ;;  %v1197_v13 = vld [vmem:[%s1974_s1 + $0x8] sm:$0xff]  ;;  %s1263_s20 = smov 126  }
   0x8   :  { %58 = vrot.lane.b32.xlu1 %v1310_v9, %s1262_s2  ;;  %v1198_v15 = vld [vmem:[%s1974_s1 + $0x10] sm:$0xff]  ;;  %s1264_s23 = smov 112   ;;  %v1199_v16 = vld [vmem:[%s1974_s1 + $0x18] sm:$0xff]  ;;  %s1265_s26 = smov 111   ;;  %v1200_v17 = vld [vmem:[%s1974_s1 + $0x20] sm:$0xff]  ;;  %v1508_v46 = vand.u32 127, %v25_v1 }
   0x9   :  { %v1330_v14 = vrot.slane %v22_v5, %v1320_v12  ;;  %s1266_s29 = smov 110   ;;  %v1201_v18 = vld [vmem:[%s1974_s1 + $0x28] sm:$0xff]  ;;  %s1267_s5 = smov 96   ;;  %v1202_v19 = vld [vmem:[%s1974_s1 + $0x30] sm:$0xff]  ;;  %v1203_v20 = vld [vmem:[%s1974_s1 + $0x38] sm:$0xff] }
   0xa   :  { %62 = vrot.lane.b32.xlu0 %v1313_v10, %s1262_s2  ;;  %s1268_s8 = smov 95   ;;  %s1269_s11 = smov 94   ;;  %v1206_v21 = vld [vmem:[%s1974_s1 + $0x48] sm:$0xff]  ;;  %v1204_v23 = vld [vmem:[%s1974_s1 + $0x40] sm:$0xff]  ;;  %v1207_v28 = vld [vmem:[%s1974_s1 + $0x50] sm:$0xff]  ;;  %vm68_vm0 = vcmp.lt.s32.totalorder %v1508_v46, 127 }
   0xb   :  { %v1205_v22 = vld [vmem:[%s1973_s0 + $0x1] ss:$4 sm:$0xf]  ;;  %v1208_v29 = vld [vmem:[%s1974_s1 + $0x58] sm:$0xff]  ;;  %v1211_v39 = vld [vmem:[%s1974_s1 + $0x70] sm:$0xff]  ;;  %vm112_vm1 = vcmp.lt.s32.totalorder %v1508_v46, 126 }
   0xc   :  { %60 = vrot.lane.b32.xlu1 %v1318_v11, %s1262_s2  ;;  %v1418_v24 = vrot.slane %v1205_v22, %v1307_v8  ;;  %v1421_v25 = vrot.slane %v1205_v22, %v1303_v6  ;;  %v1426_v26 = vrot.slane %v1205_v22, %v1320_v12  ;;  %v1431_v27 = vrot.slane %v1205_v22, %v1305_v7  ;;  %v1209_v30 = vld [vmem:[%s1974_s1 + $0x60] sm:$0xff]  ;;  %v1210_v32 = vld [vmem:[%s1974_s1 + $0x68] sm:$0xff]  ;;  %v1212_v42 = vld [vmem:[%s1974_s1 + $0x78] sm:$0xff] }
   0xd   :  { %v1213_v51 = vld [vmem:[%s1974_s1 + $0x80] sm:$0xff]  ;;  %vm156_vm2 = vcmp.lt.s32.totalorder %v1508_v46, 112  ;;  %vm200_vm3 = vcmp.lt.s32.totalorder %v1508_v46, 111  ;;  %v1214_v4 = vld [vmem:[%s1974_s1 + $0x88] sm:$0xff]  ;;  %vm244_vm4 = vcmp.lt.s32.totalorder %v1508_v46, 110  ;;  %vm288_vm5 = vcmp.lt.s32.totalorder %v1508_v46, 96 }
   0xe   :  { %93 = vperm.xlu0 %1237, %v1197_v13   ;;  %v1215_v57 = vld [vmem:[%s1973_s0 + $0x2] ss:$4 sm:$0xf]  ;;  %vm332_vm6 = vcmp.lt.s32.totalorder %v1508_v46, 95  ;;  %vm376_vm7 = vcmp.lt.s32.totalorder %v1508_v46, 94 }
   0xf   :  { %v1554_v5 = vrot.slane %v1215_v57, %v1303_v6  ;;  %v1566_v13 = vrot.slane %v1215_v57, %v1307_v8 }
  0x10   :  { %64 = vrot.lane.b32.xlu1 %v1330_v14, %s1262_s2 }
  0x12   :  { %106 = vrot.lane.b32.xlu0 %v1318_v11, %s1263_s20 }
  0x14   :  { %104 = vrot.lane.b32.xlu1 %v1310_v9, %s1263_s20 }
  0x16   :  { %110 = vrot.lane.b32.xlu0 %v1330_v14, %s1263_s20 }
  0x18   :  { %108 = vrot.lane.b32.xlu1 %v1313_v10, %s1263_s20 }
  0x1a   :  { %148 = vrot.lane.b32.xlu0 %v1310_v9, %s1264_s23 }
  0x1c   :  { %137 = vperm.xlu1 %1238, %v1198_v15  }
  0x1e   :  { %152 = vrot.lane.b32.xlu0 %v1313_v10, %s1264_s23 }
  0x20   :  { %150 = vrot.lane.b32.xlu1 %v1318_v11, %s1264_s23 }
  0x22   :  { %181 = vperm.xlu0 %1237, %v1199_v16  }
  0x24   :  { %154 = vrot.lane.b32.xlu1 %v1330_v14, %s1264_s23 }
  0x26   :  { %194 = vrot.lane.b32.xlu0 %v1318_v11, %s1265_s26 }
  0x28   :  { %192 = vrot.lane.b32.xlu1 %v1310_v9, %s1265_s26 }
  0x2a   :  { %198 = vrot.lane.b32.xlu0 %v1330_v14, %s1265_s26 }
  0x2c   :  { %196 = vrot.lane.b32.xlu1 %v1313_v10, %s1265_s26 }
  0x2e   :  { %236 = vrot.lane.b32.xlu0 %v1310_v9, %s1266_s29 }
  0x30   :  { %225 = vperm.xlu1 %1238, %v1200_v17  }
  0x32   :  { %240 = vrot.lane.b32.xlu0 %v1313_v10, %s1266_s29 }
  0x34   :  { %238 = vrot.lane.b32.xlu1 %v1318_v11, %s1266_s29 }
  0x36   :  { %269 = vperm.xlu0 %1237, %v1201_v18  }
  0x38   :  { %242 = vrot.lane.b32.xlu1 %v1330_v14, %s1266_s29 }
  0x3a   :  { %282 = vrot.lane.b32.xlu0 %v1318_v11, %s1267_s5 }
  0x3c   :  { %280 = vrot.lane.b32.xlu1 %v1310_v9, %s1267_s5 }
  0x3e   :  { %286 = vrot.lane.b32.xlu0 %v1330_v14, %s1267_s5 }
  0x40   :  { %284 = vrot.lane.b32.xlu1 %v1313_v10, %s1267_s5 }
  0x42   :  { %324 = vrot.lane.b32.xlu0 %v1310_v9, %s1268_s8 }
  0x44   :  { %313 = vperm.xlu1 %1238, %v1202_v19  }
  0x46   :  { %328 = vrot.lane.b32.xlu0 %v1313_v10, %s1268_s8 }
  0x48   :  { %326 = vrot.lane.b32.xlu1 %v1318_v11, %s1268_s8 }
  0x4a   :  { %357 = vperm.xlu0 %1237, %v1203_v20  }
  0x4c   :  { %330 = vrot.lane.b32.xlu1 %v1330_v14, %s1268_s8 }
  0x4e   :  { %370 = vrot.lane.b32.xlu0 %v1318_v11, %s1269_s11 }
  0x50   :  { %368 = vrot.lane.b32.xlu1 %v1310_v9, %s1269_s11 }
  0x52   :  { %374 = vrot.lane.b32.xlu0 %v1330_v14, %s1269_s11 }
  0x54   :  { %372 = vrot.lane.b32.xlu1 %v1313_v10, %s1269_s11 }
  0x56   :  { %439 = vperm.xlu0 %1237, %v1206_v21  }
  0x58   :  { %401 = vperm.xlu1 %1238, %v1204_v23  }
  0x5a   :  { %452 = vrot.lane.b32.xlu0 %v1418_v24, %s1262_s2 }
  0x5c   :  { %450 = vrot.lane.b32.xlu1 %v1421_v25, %s1262_s2 }
  0x5e   :  { %456 = vrot.lane.b32.xlu0 %v1426_v26, %s1262_s2 }
  0x60   :  { %454 = vrot.lane.b32.xlu1 %v1431_v27, %s1262_s2 }
  0x62   :  { %493 = vrot.lane.b32.xlu0 %v1421_v25, %s1263_s20 }
  0x64   :  { %482 = vperm.xlu1 %1238, %v1207_v28  }
  0x66   :  { %497 = vrot.lane.b32.xlu0 %v1431_v27, %s1263_s20 }
  0x68   :  { %495 = vrot.lane.b32.xlu1 %v1418_v24, %s1263_s20 }
  0x6a   :  { %525 = vperm.xlu0 %1237, %v1208_v29  }
  0x6c   :  { %499 = vrot.lane.b32.xlu1 %v1426_v26, %s1263_s20 }
  0x6e   :  { %538 = vrot.lane.b32.xlu0 %v1418_v24, %s1264_s23 }
  0x70   :  { %536 = vrot.lane.b32.xlu1 %v1421_v25, %s1264_s23 }
  0x72   :  { %542 = vrot.lane.b32.xlu0 %v1426_v26, %s1264_s23 }
  0x74   :  { %540 = vrot.lane.b32.xlu1 %v1431_v27, %s1264_s23 }
  0x76   :  { %579 = vrot.lane.b32.xlu0 %v1421_v25, %s1265_s26 }
  0x78   :  { %568 = vperm.xlu1 %1238, %v1209_v30  }
  0x7a   :  { %583 = vrot.lane.b32.xlu0 %v1431_v27, %s1265_s26  ;;  %v59_v31 = vpop.permute.xlu1 %58 }
  0x7c   :  { %581 = vrot.lane.b32.xlu1 %v1418_v24, %s1265_s26 }
  0x7d   :  { %v1471_v33 = vpop.permute.xlu0 %18 }
  0x7e   :  { %611 = vperm.xlu0 %1237, %v1210_v32   ;;  %v61_v34 = vpop.permute.xlu1 %60 }
  0x7f   :  { %v71_v52 = vsel %vm68_vm0, %v59_v31, %v61_v34 }
  0x80   :  { %585 = vrot.lane.b32.xlu1 %v1426_v26, %s1265_s26  ;;  %v78_v58 = vrot.slane %v71_v52, %v1303_v6 }
  0x81   :  { %v48_v35 = vpop.permute.xlu0 %47 }
  0x82   :  { %624 = vrot.lane.b32.xlu0 %v1418_v24, %s1266_s29  ;;  %v65_v37 = vpop.permute.xlu1 %64  ;;  %v50_v56 = vmul.f32 %v48_v35, %v1310_v9  ;;  %v51_v59 = vmul.f32 %v48_v35, %v1318_v11  ;;  %v52_v60 = vmul.f32 %v48_v35, %v1313_v10  ;;  %v53_v1 = vmul.f32 %v48_v35, %v1330_v14 }
  0x83   :  { %v72_v62 = vsel %vm68_vm0, %v65_v37, %v59_v31  ;;  %v1557_v9 = vrot.slane %v1215_v57, %v1305_v7  ;;  %v1569_v14 = vrot.slane %v1215_v57, %v1320_v12 }
  0x84   :  { %622 = vrot.lane.b32.xlu1 %v1421_v25, %s1266_s29  ;;  %v54_v10 = vadd.f32 %v50_v56, %v1471_v33  ;;  %v55_v15 = vadd.f32 %v51_v59, %v1471_v33  ;;  %v56_v7 = vadd.f32 %v52_v60, %v1471_v33  ;;  %v90_v16 = vrot.slane %v72_v62, %v1303_v6 }
  0x85   :  { %v63_v36 = vpop.permute.xlu0 %62  ;;  %v57_v21 = vadd.f32 %v53_v1, %v1471_v33 }
  0x86   :  { %628 = vrot.lane.b32.xlu0 %v1426_v26, %s1266_s29  ;;  %v1490_v40 = vpop.permute.xlu1 %104  ;;  %v69_v53 = vsel %vm68_vm0, %v63_v36, %v65_v37  ;;  %v70_v54 = vsel %vm68_vm0, %v61_v34, %v63_v36 }
  0x87   :  { %v82_v63 = vrot.slane %v70_v54, %v1303_v6  ;;  %v86_v0 = vrot.slane %v69_v53, %v1303_v6 }
  0x88   :  { %626 = vrot.lane.b32.xlu1 %v1431_v27, %s1266_s29 }
  0x89   :  { %v1483_v38 = vpop.permute.xlu0 %93 }
  0x8a   :  { %665 = vrot.lane.b32.xlu0 %v1421_v25, %s1267_s5  ;;  %v109_v44 = vpop.permute.xlu1 %108  ;;  %v96_v2 = vmul.f32 %v1483_v38, %v78_v58  ;;  %v97_v19 = vmul.f32 %v1483_v38, %v82_v63  ;;  %v98_v8 = vmul.f32 %v1483_v38, %v86_v0  ;;  %v99_v22 = vmul.f32 %v1483_v38, %v90_v16 }
  0x8c   :  { %654 = vperm.xlu1 %1238, %v1211_v39   ;;  %v100_v23 = vadd.f32 %v96_v2, %v54_v10  ;;  %v1216_v39 = vld [vmem:[%s1974_s1 + $0x90] sm:$0xff]  ;;  %v103_v52 = vadd.f32 %v99_v22, %v57_v21 }
  0x8d   :  { %v107_v41 = vpop.permute.xlu0 %106 }
  0x8e   :  { %669 = vrot.lane.b32.xlu0 %v1431_v27, %s1267_s5  ;;  %v115_v11 = vsel %vm112_vm1, %v1490_v40, %v107_v41  ;;  %v114_v17 = vsel %vm112_vm1, %v107_v41, %v109_v44  ;;  %v101_v41 = vadd.f32 %v97_v19, %v55_v15 }
  0x8f   :  { %v122_v28 = vrot.slane %v115_v11, %v1303_v6  ;;  %v126_v30 = vrot.slane %v114_v17, %v1303_v6 }
  0x90   :  { %667 = vrot.lane.b32.xlu1 %v1418_v24, %s1267_s5 }
  0x91   :  { %v1499_v43 = vpop.permute.xlu0 %110 }
  0x92   :  { %697 = vperm.xlu0 %1237, %v1212_v42   ;;  %v113_v31 = vsel %vm112_vm1, %v109_v44, %v1499_v43  ;;  %v116_v33 = vsel %vm112_vm1, %v1499_v43, %v1490_v40  ;;  %v102_v42 = vadd.f32 %v98_v8, %v56_v7 }
  0x93   :  { %v130_v53 = vrot.slane %v113_v31, %v1303_v6  ;;  %v134_v54 = vrot.slane %v116_v33, %v1303_v6 }
  0x94   :  { %671 = vrot.lane.b32.xlu1 %v1426_v26, %s1267_s5 }
  0x95   :  { %v1503_v45 = vpop.permute.xlu0 %148 }
  0x96   :  { %710 = vrot.lane.b32.xlu0 %v1418_v24, %s1268_s8 }
  0x97   :  { %v1510_v47 = vpop.permute.xlu1 %137 }
  0x98   :  { %708 = vrot.lane.b32.xlu1 %v1421_v25, %s1268_s8  ;;  %v140_v44 = vmul.f32 %v1510_v47, %v122_v28  ;;  %v141_v43 = vmul.f32 %v1510_v47, %v126_v30  ;;  %v143_v62 = vmul.f32 %v1510_v47, %v134_v54 }
  0x99   :  { %v153_v48 = vpop.permute.xlu0 %152 }
  0x9a   :  { %714 = vrot.lane.b32.xlu0 %v1426_v26, %s1268_s8  ;;  %v144_v63 = vadd.f32 %v140_v44, %v100_v23  ;;  %v145_v1 = vadd.f32 %v141_v43, %v101_v41 }
  0x9b   :  { %v151_v49 = vpop.permute.xlu1 %150 }
  0x9c   :  { %712 = vrot.lane.b32.xlu1 %v1431_v27, %s1268_s8  ;;  %v158_v12 = vsel %vm156_vm2, %v151_v49, %v153_v48  ;;  %v159_v20 = vsel %vm156_vm2, %v1503_v45, %v151_v49 }
  0x9d   :  { %v1519_v50 = vpop.permute.xlu0 %181  ;;  %v166_v35 = vrot.slane %v159_v20, %v1303_v6  ;;  %v170_v36 = vrot.slane %v158_v12, %v1303_v6 }
  0x9e   :  { %751 = vrot.lane.b32.xlu0 %v1421_v25, %s1269_s11 }
  0x9f   :  { %v155_v55 = vpop.permute.xlu1 %154  ;;  %v184_v56 = vmul.f32 %v1519_v50, %v166_v35  ;;  %v185_v57 = vmul.f32 %v1519_v50, %v170_v36 }
  0xa0   :  { %740 = vperm.xlu1 %1238, %v1213_v51   ;;  %v157_v32 = vsel %vm156_vm2, %v153_v48, %v155_v55  ;;  %v160_v37 = vsel %vm156_vm2, %v155_v55, %v1503_v45 }
  0xa1   :  { %v195_v61 = vpop.permute.xlu0 %194  ;;  %v174_v48 = vrot.slane %v157_v32, %v1303_v6  ;;  %v178_v55 = vrot.slane %v160_v37, %v1303_v6  ;;  %v188_v17 = vadd.f32 %v184_v56, %v144_v63  ;;  %v1219_v56 = vld [vmem:[%s1974_s1 + $0xa8] sm:$0xff] }
  0xa2   :  { %755 = vrot.lane.b32.xlu0 %v1431_v27, %s1269_s11 }
  0xa3   :  { %v193_v3 = vpop.permute.xlu1 %192  ;;  %v186_v2 = vmul.f32 %v1519_v50, %v174_v48  ;;  %v187_v15 = vmul.f32 %v1519_v50, %v178_v55  ;;  %v147_v50 = vadd.f32 %v143_v62, %v103_v52 }
  0xa4   :  { %753 = vrot.lane.b32.xlu1 %v1418_v24, %s1269_s11  ;;  %v203_v40 = vsel %vm200_vm3, %v193_v3, %v195_v61 }
  0xa5   :  { %v199_v18 = vpop.permute.xlu0 %198  ;;  %v210_v58 = vrot.slane %v203_v40, %v1303_v6 }
  0xa6   :  { %783 = vperm.xlu0 %1237, %v1214_v4   ;;  %v204_v59 = vsel %vm200_vm3, %v199_v18, %v193_v3  ;;  %v1217_v3 = vld [vmem:[%s1974_s1 + $0x98] sm:$0xff] }
  0xa7   :  { %v197_v29 = vpop.permute.xlu1 %196 }
  0xa8   :  { %v202_v34 = vsel %vm200_vm3, %v195_v61, %v197_v29  ;;  %757 = vrot.lane.b32.xlu1 %v1426_v26, %s1269_s11  ;;  %v201_v45 = vsel %vm200_vm3, %v197_v29, %v199_v18  ;;  %v142_v61 = vmul.f32 %v1510_v47, %v130_v53  ;;  %v222_v47 = vrot.slane %v204_v59, %v1303_v6  ;;  %v1218_v53 = vld [vmem:[%s1974_s1 + $0xa0] sm:$0xff] }
  0xa9   :  { %v237_v38 = vpop.permute.xlu0 %236  ;;  %v214_v49 = vrot.slane %v202_v34, %v1303_v6  ;;  %v218_v0 = vrot.slane %v201_v45, %v1303_v6  ;;  %v189_v18 = vadd.f32 %v185_v57, %v145_v1  ;;  %v191_v34 = vadd.f32 %v187_v15, %v147_v50 }
  0xaa   :  { %832 = vrot.lane.b32.xlu0 %v1554_v5, %s1262_s2  ;;  %v146_v20 = vadd.f32 %v142_v61, %v102_v42 }
  0xab   :  { %v226_v51 = vpop.permute.xlu1 %225 }
  0xac   :  { %821 = vperm.xlu1 %1238, %v1216_v39   ;;  %v228_v4 = vmul.f32 %v226_v51, %v210_v58  ;;  %v229_v10 = vmul.f32 %v226_v51, %v214_v49  ;;  %v230_v21 = vmul.f32 %v226_v51, %v218_v0  ;;  %v231_v22 = vmul.f32 %v226_v51, %v222_v47 }
  0xad   :  { %v241_v60 = vpop.permute.xlu0 %240  ;;  %v190_v32 = vadd.f32 %v186_v2, %v146_v20 }
  0xae   :  { %836 = vrot.lane.b32.xlu0 %v1557_v9, %s1262_s2  ;;  %v232_v23 = vadd.f32 %v228_v4, %v188_v17  ;;  %v233_v28 = vadd.f32 %v229_v10, %v189_v18  ;;  %v235_v40 = vadd.f32 %v231_v22, %v191_v34  ;;  %v1220_v34 = vld [vmem:[%s1974_s1 + $0xb0] sm:$0xff] }
  0xaf   :  { %v239_v11 = vpop.permute.xlu1 %238  ;;  %v234_v44 = vadd.f32 %v230_v21, %v190_v32 }
  0xb0   :  { %v246_v7 = vsel %vm244_vm4, %v239_v11, %v241_v60  ;;  %v247_v16 = vsel %vm244_vm4, %v237_v38, %v239_v11  ;;  %834 = vrot.lane.b32.xlu1 %v1566_v13, %s1262_s2 }
  0xb1   :  { %v254_v19 = vrot.slane %v247_v16, %v1303_v6  ;;  %v258_v8 = vrot.slane %v246_v7, %v1303_v6  ;;  %v270_v12 = vpop.permute.xlu0 %269 }
  0xb2   :  { %864 = vperm.xlu0 %1237, %v1217_v3  }
  0xb3   :  { %v272_v29 = vmul.f32 %v270_v12, %v254_v19  ;;  %v273_v30 = vmul.f32 %v270_v12, %v258_v8  ;;  %v243_v31 = vpop.permute.xlu1 %242 }
  0xb4   :  { %v245_v33 = vsel %vm244_vm4, %v241_v60, %v243_v31  ;;  %v248_v35 = vsel %vm244_vm4, %v243_v31, %v237_v38  ;;  %838 = vrot.lane.b32.xlu1 %v1569_v14, %s1262_s2 }
  0xb5   :  { %v276_v36 = vadd.f32 %v272_v29, %v232_v23  ;;  %v277_v37 = vadd.f32 %v273_v30, %v233_v28  ;;  %v262_v39 = vrot.slane %v245_v33, %v1303_v6  ;;  %v266_v41 = vrot.slane %v248_v35, %v1303_v6  ;;  %v283_v42 = vpop.permute.xlu0 %282 }
  0xb6   :  { %877 = vrot.lane.b32.xlu0 %v1566_v13, %s1263_s20 }
  0xb7   :  { %v274_v43 = vmul.f32 %v270_v12, %v262_v39  ;;  %v275_v48 = vmul.f32 %v270_v12, %v266_v41  ;;  %v281_v45 = vpop.permute.xlu1 %280 }
  0xb8   :  { %v291_v38 = vsel %vm288_vm5, %v281_v45, %v283_v42  ;;  %875 = vrot.lane.b32.xlu1 %v1554_v5, %s1263_s20 }
  0xb9   :  { %v278_v49 = vadd.f32 %v274_v43, %v234_v44  ;;  %v279_v51 = vadd.f32 %v275_v48, %v235_v40  ;;  %v287_v52 = vpop.permute.xlu0 %286  ;;  %v298_v62 = vrot.slane %v291_v38, %v1303_v6  ;;  %v1221_v43 = vld [vmem:[%s1974_s1 + $0xb8] sm:$0xff] }
  0xba   :  { %v292_v54 = vsel %vm288_vm5, %v287_v52, %v281_v45  ;;  %879 = vrot.lane.b32.xlu0 %v1557_v9, %s1263_s20 }
  0xbb   :  { %v285_v55 = vpop.permute.xlu1 %284  ;;  %v310_v63 = vrot.slane %v292_v54, %v1303_v6 }
  0xbc   :  { %v289_v57 = vsel %vm288_vm5, %v285_v55, %v287_v52  ;;  %v290_v58 = vsel %vm288_vm5, %v283_v42, %v285_v55  ;;  %907 = vperm.xlu1 %1238, %v1218_v53  }
  0xbd   :  { %v302_v59 = vrot.slane %v290_v58, %v1303_v6  ;;  %v306_v60 = vrot.slane %v289_v57, %v1303_v6  ;;  %v325_v61 = vpop.permute.xlu0 %324 }
  0xbe   :  { %950 = vperm.xlu0 %1237, %v1219_v56  }
  0xbf   :  { %v314_v0 = vpop.permute.xlu1 %313 }
  0xc0   :  { %v316_v1 = vmul.f32 %v314_v0, %v298_v62  ;;  %v317_v2 = vmul.f32 %v314_v0, %v302_v59  ;;  %v318_v4 = vmul.f32 %v314_v0, %v306_v60  ;;  %v319_v10 = vmul.f32 %v314_v0, %v310_v63  ;;  %881 = vrot.lane.b32.xlu1 %v1569_v14, %s1263_s20 }
  0xc1   :  { %v329_v11 = vpop.permute.xlu0 %328 }
  0xc2   :  { %v320_v3 = vadd.f32 %v316_v1, %v276_v36  ;;  %v321_v15 = vadd.f32 %v317_v2, %v277_v37  ;;  %v322_v47 = vadd.f32 %v318_v4, %v278_v49  ;;  %v323_v7 = vadd.f32 %v319_v10, %v279_v51  ;;  %920 = vrot.lane.b32.xlu0 %v1566_v13, %s1264_s23 }
  0xc3   :  { %v327_v16 = vpop.permute.xlu1 %326 }
  0xc4   :  { %v334_v17 = vsel %vm332_vm6, %v327_v16, %v329_v11  ;;  %v335_v18 = vsel %vm332_vm6, %v325_v61, %v327_v16  ;;  %918 = vrot.lane.b32.xlu1 %v1554_v5, %s1264_s23 }
  0xc5   :  { %v342_v19 = vrot.slane %v335_v18, %v1303_v6  ;;  %v346_v8 = vrot.slane %v334_v17, %v1303_v6  ;;  %v358_v12 = vpop.permute.xlu0 %357 }
  0xc6   :  { %924 = vrot.lane.b32.xlu0 %v1569_v14, %s1264_s23 }
  0xc7   :  { %v360_v20 = vmul.f32 %v358_v12, %v342_v19  ;;  %v361_v50 = vmul.f32 %v358_v12, %v346_v8  ;;  %v331_v21 = vpop.permute.xlu1 %330  ;;  %v1222_v8 = vld [vmem:[%s1974_s1 + $0xc0] sm:$0xff] }
  0xc8   :  { %v333_v22 = vsel %vm332_vm6, %v329_v11, %v331_v21  ;;  %v336_v23 = vsel %vm332_vm6, %v331_v21, %v325_v61  ;;  %922 = vrot.lane.b32.xlu1 %v1557_v9, %s1264_s23 }
  0xc9   :  { %v364_v28 = vadd.f32 %v360_v20, %v320_v3  ;;  %v365_v29 = vadd.f32 %v361_v50, %v321_v15  ;;  %v350_v30 = vrot.slane %v333_v22, %v1303_v6  ;;  %v354_v31 = vrot.slane %v336_v23, %v1303_v6  ;;  %v371_v32 = vpop.permute.xlu0 %370 }
  0xca   :  { %961 = vrot.lane.b32.xlu0 %v1554_v5, %s1265_s26 }
  0xcb   :  { %v362_v33 = vmul.f32 %v358_v12, %v350_v30  ;;  %v363_v35 = vmul.f32 %v358_v12, %v354_v31  ;;  %v369_v36 = vpop.permute.xlu1 %368 }
  0xcc   :  { %v379_v37 = vsel %vm376_vm7, %v369_v36, %v371_v32  ;;  %993 = vperm.xlu1 %1238, %v1220_v34  }
  0xcd   :  { %v366_v39 = vadd.f32 %v362_v33, %v322_v47  ;;  %v367_v41 = vadd.f32 %v363_v35, %v323_v7  ;;  %v375_v42 = vpop.permute.xlu0 %374  ;;  %v386_v52 = vrot.slane %v379_v37, %v1303_v6  ;;  %v1223_v35 = vld [vmem:[%s1974_s1 + $0xc8] sm:$0xff] }
  0xce   :  { %v380_v44 = vsel %vm376_vm7, %v375_v42, %v369_v36  ;;  %965 = vrot.lane.b32.xlu0 %v1557_v9, %s1265_s26 }
  0xcf   :  { %v373_v40 = vpop.permute.xlu1 %372  ;;  %v398_v53 = vrot.slane %v380_v44, %v1303_v6 }
  0xd0   :  { %v377_v48 = vsel %vm376_vm7, %v373_v40, %v375_v42  ;;  %v378_v45 = vsel %vm376_vm7, %v371_v32, %v373_v40  ;;  %963 = vrot.lane.b32.xlu1 %v1566_v13, %s1265_s26 }
  0xd1   :  { %v390_v38 = vrot.slane %v378_v45, %v1303_v6  ;;  %v394_v49 = vrot.slane %v377_v48, %v1303_v6  ;;  %v440_v51 = vpop.permute.xlu0 %439 }
  0xd2   :  { %1036 = vperm.xlu0 %1237, %v1221_v43   ;;  %v442_v59 = vmul.f32 %v440_v51, %v1421_v25  ;;  %v443_v60 = vmul.f32 %v440_v51, %v1418_v24  ;;  %v444_v61 = vmul.f32 %v440_v51, %v1431_v27  ;;  %v445_v4 = vmul.f32 %v440_v51, %v1426_v26 }
  0xd3   :  { %v402_v54 = vpop.permute.xlu1 %401 }
  0xd4   :  { %v404_v55 = vmul.f32 %v402_v54, %v386_v52  ;;  %v405_v56 = vmul.f32 %v402_v54, %v390_v38  ;;  %v406_v57 = vmul.f32 %v402_v54, %v394_v49  ;;  %v407_v58 = vmul.f32 %v402_v54, %v398_v53  ;;  %967 = vrot.lane.b32.xlu1 %v1569_v14, %s1265_s26 }
  0xd5   :  { %v453_v62 = vpop.permute.xlu0 %452 }
  0xd6   :  { %v408_v63 = vadd.f32 %v404_v55, %v364_v28  ;;  %v409_v0 = vadd.f32 %v405_v56, %v365_v29  ;;  %v410_v1 = vadd.f32 %v406_v57, %v366_v39  ;;  %v411_v2 = vadd.f32 %v407_v58, %v367_v41  ;;  %1006 = vrot.lane.b32.xlu0 %v1566_v13, %s1266_s29 }
  0xd7   :  { %v451_v10 = vpop.permute.xlu1 %450 }
  0xd8   :  { %v460_v11 = vsel %vm68_vm0, %v451_v10, %v453_v62  ;;  %1004 = vrot.lane.b32.xlu1 %v1554_v5, %s1266_s29  ;;  %v446_v24 = vadd.f32 %v442_v59, %v408_v63  ;;  %v447_v25 = vadd.f32 %v443_v60, %v409_v0  ;;  %v448_v27 = vadd.f32 %v444_v61, %v410_v1 }
  0xd9   :  { %v457_v3 = vpop.permute.xlu0 %456  ;;  %v449_v15 = vadd.f32 %v445_v4, %v411_v2  ;;  %v467_v12 = vrot.slane %v460_v11, %v1303_v6 }
  0xda   :  { %v461_v47 = vsel %vm68_vm0, %v457_v3, %v451_v10  ;;  %1010 = vrot.lane.b32.xlu0 %v1569_v14, %s1266_s29  ;;  %v1224_v10 = vld [vmem:[%s1974_s1 + $0xd0] sm:$0xff]  ;;  %s1270_s1 = smov [#allocation2]  }
  0xdb   :  { %v455_v7 = vpop.permute.xlu1 %454  ;;  %v479_v20 = vrot.slane %v461_v47, %v1303_v6 }
  0xdc   :  { %v458_v26 = vsel %vm68_vm0, %v455_v7, %v457_v3  ;;  %v459_v16 = vsel %vm68_vm0, %v453_v62, %v455_v7  ;;  %1008 = vrot.lane.b32.xlu1 %v1557_v9, %s1266_s29 }
  0xdd   :  { %v471_v17 = vrot.slane %v459_v16, %v1303_v6  ;;  %v475_v18 = vrot.slane %v458_v26, %v1303_v6  ;;  %v494_v19 = vpop.permute.xlu0 %493 }
  0xde   :  { %1047 = vrot.lane.b32.xlu0 %v1554_v5, %s1267_s5 }
  0xdf   :  { %v483_v50 = vpop.permute.xlu1 %482 }
  0xe0   :  { %v485_v21 = vmul.f32 %v483_v50, %v467_v12  ;;  %v486_v22 = vmul.f32 %v483_v50, %v471_v17  ;;  %v487_v23 = vmul.f32 %v483_v50, %v475_v18  ;;  %v488_v28 = vmul.f32 %v483_v50, %v479_v20  ;;  %1079 = vperm.xlu1 %1238, %v1222_v8  }
  0xe1   :  { %v498_v29 = vpop.permute.xlu0 %497 }
  0xe2   :  { %v489_v30 = vadd.f32 %v485_v21, %v446_v24  ;;  %v490_v31 = vadd.f32 %v486_v22, %v447_v25  ;;  %v491_v32 = vadd.f32 %v487_v23, %v448_v27  ;;  %v492_v34 = vadd.f32 %v488_v28, %v449_v15  ;;  %1051 = vrot.lane.b32.xlu0 %v1557_v9, %s1267_s5 }
  0xe3   :  { %v496_v33 = vpop.permute.xlu1 %495 }
  0xe4   :  { %v502_v36 = vsel %vm112_vm1, %v496_v33, %v498_v29  ;;  %v503_v37 = vsel %vm112_vm1, %v494_v19, %v496_v33  ;;  %1049 = vrot.lane.b32.xlu1 %v1566_v13, %s1267_s5 }
  0xe5   :  { %v510_v39 = vrot.slane %v503_v37, %v1303_v6  ;;  %v514_v41 = vrot.slane %v502_v36, %v1303_v6  ;;  %v526_v42 = vpop.permute.xlu0 %525 }
  0xe6   :  { %1122 = vperm.xlu0 %1237, %v1223_v35  }
  0xe7   :  { %v528_v44 = vmul.f32 %v526_v42, %v510_v39  ;;  %v529_v40 = vmul.f32 %v526_v42, %v514_v41  ;;  %v500_v43 = vpop.permute.xlu1 %499 }
  0xe8   :  { %v501_v48 = vsel %vm112_vm1, %v498_v29, %v500_v43  ;;  %v504_v45 = vsel %vm112_vm1, %v500_v43, %v494_v19  ;;  %1053 = vrot.lane.b32.xlu1 %v1569_v14, %s1267_s5 }
  0xe9   :  { %v532_v38 = vadd.f32 %v528_v44, %v489_v30  ;;  %v533_v49 = vadd.f32 %v529_v40, %v490_v31  ;;  %v518_v51 = vrot.slane %v501_v48, %v1303_v6  ;;  %v522_v52 = vrot.slane %v504_v45, %v1303_v6  ;;  %v539_v53 = vpop.permute.xlu0 %538 }
  0xea   :  { %1092 = vrot.lane.b32.xlu0 %v1566_v13, %s1268_s8 }
  0xeb   :  { %v530_v54 = vmul.f32 %v526_v42, %v518_v51  ;;  %v531_v55 = vmul.f32 %v526_v42, %v522_v52  ;;  %v537_v56 = vpop.permute.xlu1 %536 }
  0xec   :  { %v546_v57 = vsel %vm156_vm2, %v537_v56, %v539_v53  ;;  %1090 = vrot.lane.b32.xlu1 %v1554_v5, %s1268_s8 }
  0xed   :  { %v534_v58 = vadd.f32 %v530_v54, %v491_v32  ;;  %v535_v59 = vadd.f32 %v531_v55, %v492_v34  ;;  %v543_v60 = vpop.permute.xlu0 %542  ;;  %v553_v11 = vrot.slane %v546_v57, %v1303_v6 }
  0xee   :  { %v547_v61 = vsel %vm156_vm2, %v543_v60, %v537_v56  ;;  %1096 = vrot.lane.b32.xlu0 %v1569_v14, %s1268_s8 }
  0xef   :  { %v541_v62 = vpop.permute.xlu1 %540  ;;  %v565_v24 = vrot.slane %v547_v61, %v1303_v6 }
  0xf0   :  { %v544_v63 = vsel %vm156_vm2, %v541_v62, %v543_v60  ;;  %v545_v0 = vsel %vm156_vm2, %v539_v53, %v541_v62  ;;  %1094 = vrot.lane.b32.xlu1 %v1557_v9, %s1268_s8  ;;  %s1186_s8 = sshll.u32 %s1270_s1, 4  ;;  %s1187_s8 = int_to_ptr.vmem [resolvable:$true] %s1186_s8 }
  0xf1   :  { %v557_v1 = vrot.slane %v545_v0, %v1303_v6  ;;  %v561_v2 = vrot.slane %v544_v63, %v1303_v6  ;;  %v580_v4 = vpop.permute.xlu0 %579  ;;  %p1244_p1 = scmp.lt.s32.totalorder %s1187_s8, %s1187_s8 }
  0xf2   :  { %1133 = vrot.lane.b32.xlu0 %v1554_v5, %s1269_s11 }
  0xf3   :  { %v569_v25 = vpop.permute.xlu1 %568 }
  0xf4   :  { %v571_v27 = vmul.f32 %v569_v25, %v553_v11  ;;  %v572_v3 = vmul.f32 %v569_v25, %v557_v1  ;;  %v573_v15 = vmul.f32 %v569_v25, %v561_v2  ;;  %v574_v47 = vmul.f32 %v569_v25, %v565_v24  ;;  %1165 = vperm.xlu1 %1238, %v1224_v10  }
  0xf5   :  { %v584_v7 = vpop.permute.xlu0 %583 }
  0xf6   :  { %v575_v26 = vadd.f32 %v571_v27, %v532_v38  ;;  %v576_v16 = vadd.f32 %v572_v3, %v533_v49  ;;  %v577_v17 = vadd.f32 %v573_v15, %v534_v58  ;;  %v578_v18 = vadd.f32 %v574_v47, %v535_v59  ;;  %1137 = vrot.lane.b32.xlu0 %v1557_v9, %s1269_s11 }
  0xf7   :  { %v582_v19 = vpop.permute.xlu1 %581 }
  0xf8   :  { %v588_v8 = vsel %vm200_vm3, %v582_v19, %v584_v7  ;;  %v589_v12 = vsel %vm200_vm3, %v580_v4, %v582_v19  ;;  %1135 = vrot.lane.b32.xlu1 %v1566_v13, %s1269_s11 }
  0xf9   :  { %v596_v20 = vrot.slane %v589_v12, %v1303_v6  ;;  %v600_v50 = vrot.slane %v588_v8, %v1303_v6  ;;  %v612_v21 = vpop.permute.xlu0 %611 }
  0xfb   :  { %v614_v22 = vmul.f32 %v612_v21, %v596_v20  ;;  %v615_v23 = vmul.f32 %v612_v21, %v600_v50  ;;  %v586_v28 = vpop.permute.xlu1 %585 }
  0xfc   :  { %v587_v29 = vsel %vm200_vm3, %v584_v7, %v586_v28  ;;  %v590_v30 = vsel %vm200_vm3, %v586_v28, %v580_v4  ;;  %1139 = vrot.lane.b32.xlu1 %v1569_v14, %s1269_s11  ;;  %s1239_s11 = scalar_lea.vmem %s1187_s8, 512 }
  0xfd   :  { %v618_v31 = vadd.f32 %v614_v22, %v575_v26  ;;  %v619_v32 = vadd.f32 %v615_v23, %v576_v16  ;;  %v604_v34 = vrot.slane %v587_v29, %v1303_v6  ;;  %v608_v33 = vrot.slane %v590_v30, %v1303_v6  ;;  %v625_v35 = vpop.permute.xlu0 %624  ;;  %p1240_p0 = scmp.ne.s32.totalorder %s1187_s8, %s1239_s11  ;;  %p1245_p2 = scmp.lt.s32.totalorder %s1239_s11, %s1239_s11 }
  0xff   :  { %v616_v36 = vmul.f32 %v612_v21, %v604_v34  ;;  %v617_v37 = vmul.f32 %v612_v21, %v608_v33  ;;  %v623_v39 = vpop.permute.xlu1 %622  ;;  %p1246_p3 = por %p1245_p2, %p1244_p1 }
 0x100   :  { %v632_v41 = vsel %vm244_vm4, %v623_v39, %v625_v35 }
 0x101   :  { %v620_v42 = vadd.f32 %v616_v36, %v577_v17  ;;  %v621_v44 = vadd.f32 %v617_v37, %v578_v18  ;;  %v629_v40 = vpop.permute.xlu0 %628  ;;  %v639_v53 = vrot.slane %v632_v41, %v1303_v6  ;;  %p1247_p4 = pnand %p1246_p3, %p1240_p0 }
 0x102   :  { %v633_v43 = vsel %vm244_vm4, %v629_v40, %v623_v39 }
 0x103   :  { %v627_v48 = vpop.permute.xlu1 %626  ;;  %v651_v54 = vrot.slane %v633_v43, %v1303_v6 }
 0x104   :  { %v630_v45 = vsel %vm244_vm4, %v627_v48, %v629_v40  ;;  %v631_v38 = vsel %vm244_vm4, %v625_v35, %v627_v48 }
 0x105   :  { %v643_v49 = vrot.slane %v631_v38, %v1303_v6  ;;  %v647_v51 = vrot.slane %v630_v45, %v1303_v6  ;;  %v666_v52 = vpop.permute.xlu0 %665 }
 0x107   :  { %v655_v55 = vpop.permute.xlu1 %654 }
 0x108   :  { %v657_v56 = vmul.f32 %v655_v55, %v639_v53  ;;  %v658_v57 = vmul.f32 %v655_v55, %v643_v49  ;;  %v659_v58 = vmul.f32 %v655_v55, %v647_v51  ;;  %v660_v59 = vmul.f32 %v655_v55, %v651_v54 }
 0x109   :  { %v670_v60 = vpop.permute.xlu0 %669 }
 0x10a   :  { %v661_v61 = vadd.f32 %v657_v56, %v618_v31  ;;  %v662_v62 = vadd.f32 %v658_v57, %v619_v32  ;;  %v663_v63 = vadd.f32 %v659_v58, %v620_v42  ;;  %v664_v0 = vadd.f32 %v660_v59, %v621_v44 }
 0x10b   :  { %v668_v1 = vpop.permute.xlu1 %667 }
 0x10c   :  { %v674_v2 = vsel %vm288_vm5, %v668_v1, %v670_v60  ;;  %v675_v4 = vsel %vm288_vm5, %v666_v52, %v668_v1 }
 0x10d   :  { %v682_v10 = vrot.slane %v675_v4, %v1303_v6  ;;  %v686_v11 = vrot.slane %v674_v2, %v1303_v6  ;;  %v698_v24 = vpop.permute.xlu0 %697 }
 0x10f   :  { %v700_v25 = vmul.f32 %v698_v24, %v682_v10  ;;  %v701_v27 = vmul.f32 %v698_v24, %v686_v11  ;;  %v672_v3 = vpop.permute.xlu1 %671 }
 0x110   :  { %v673_v15 = vsel %vm288_vm5, %v670_v60, %v672_v3  ;;  %v676_v47 = vsel %vm288_vm5, %v672_v3, %v666_v52 }
 0x111   :  { %v704_v7 = vadd.f32 %v700_v25, %v661_v61  ;;  %v705_v26 = vadd.f32 %v701_v27, %v662_v62  ;;  %v690_v16 = vrot.slane %v673_v15, %v1303_v6  ;;  %v694_v17 = vrot.slane %v676_v47, %v1303_v6  ;;  %v711_v18 = vpop.permute.xlu0 %710 }
 0x113   :  { %v702_v19 = vmul.f32 %v698_v24, %v690_v16  ;;  %v703_v8 = vmul.f32 %v698_v24, %v694_v17  ;;  %v709_v12 = vpop.permute.xlu1 %708 }
 0x114   :  { %v718_v20 = vsel %vm332_vm6, %v709_v12, %v711_v18 }
 0x115   :  { %v706_v50 = vadd.f32 %v702_v19, %v663_v63  ;;  %v707_v21 = vadd.f32 %v703_v8, %v664_v0  ;;  %v715_v22 = vpop.permute.xlu0 %714  ;;  %v725_v33 = vrot.slane %v718_v20, %v1303_v6 }
 0x116   :  { %v719_v23 = vsel %vm332_vm6, %v715_v22, %v709_v12 }
 0x117   :  { %v713_v28 = vpop.permute.xlu1 %712  ;;  %v737_v35 = vrot.slane %v719_v23, %v1303_v6 }
 0x118   :  { %v716_v29 = vsel %vm332_vm6, %v713_v28, %v715_v22  ;;  %v717_v30 = vsel %vm332_vm6, %v711_v18, %v713_v28 }
 0x119   :  { %v729_v31 = vrot.slane %v717_v30, %v1303_v6  ;;  %v733_v32 = vrot.slane %v716_v29, %v1303_v6  ;;  %v752_v34 = vpop.permute.xlu0 %751 }
 0x11b   :  { %v741_v36 = vpop.permute.xlu1 %740 }
 0x11c   :  { %v743_v37 = vmul.f32 %v741_v36, %v725_v33  ;;  %v744_v39 = vmul.f32 %v741_v36, %v729_v31  ;;  %v745_v41 = vmul.f32 %v741_v36, %v733_v32  ;;  %v746_v42 = vmul.f32 %v741_v36, %v737_v35 }
 0x11d   :  { %v756_v44 = vpop.permute.xlu0 %755 }
 0x11e   :  { %v747_v40 = vadd.f32 %v743_v37, %v704_v7  ;;  %v748_v43 = vadd.f32 %v744_v39, %v705_v26  ;;  %v749_v48 = vadd.f32 %v745_v41, %v706_v50  ;;  %v750_v45 = vadd.f32 %v746_v42, %v707_v21 }
 0x11f   :  { %v754_v38 = vpop.permute.xlu1 %753 }
 0x120   :  { %v760_v49 = vsel %vm376_vm7, %v754_v38, %v756_v44  ;;  %v761_v51 = vsel %vm376_vm7, %v752_v34, %v754_v38 }
 0x121   :  { %v768_v52 = vrot.slane %v761_v51, %v1303_v6  ;;  %v772_v53 = vrot.slane %v760_v49, %v1303_v6  ;;  %v784_v54 = vpop.permute.xlu0 %783 }
 0x123   :  { %v786_v55 = vmul.f32 %v784_v54, %v768_v52  ;;  %v787_v56 = vmul.f32 %v784_v54, %v772_v53  ;;  %v758_v57 = vpop.permute.xlu1 %757 }
 0x124   :  { %v759_v58 = vsel %vm376_vm7, %v756_v44, %v758_v57  ;;  %v762_v59 = vsel %vm376_vm7, %v758_v57, %v752_v34 }
 0x125   :  { %v790_v60 = vadd.f32 %v786_v55, %v747_v40  ;;  %v791_v61 = vadd.f32 %v787_v56, %v748_v43  ;;  %v776_v62 = vrot.slane %v759_v58, %v1303_v6  ;;  %v780_v63 = vrot.slane %v762_v59, %v1303_v6  ;;  %v833_v0 = vpop.permute.xlu0 %832 }
 0x127   :  { %v788_v1 = vmul.f32 %v784_v54, %v776_v62  ;;  %v789_v2 = vmul.f32 %v784_v54, %v780_v63  ;;  %v822_v4 = vpop.permute.xlu1 %821 }
 0x128   :  { %v826_v10 = vmul.f32 %v822_v4, %v1557_v9  ;;  %v827_v11 = vmul.f32 %v822_v4, %v1569_v14  ;;  %v824_v3 = vmul.f32 %v822_v4, %v1554_v5  ;;  %v825_v15 = vmul.f32 %v822_v4, %v1566_v13 }
 0x129   :  { %v792_v24 = vadd.f32 %v788_v1, %v749_v48  ;;  %v793_v25 = vadd.f32 %v789_v2, %v750_v45  ;;  %v837_v27 = vpop.permute.xlu0 %836 }
 0x12a   :  { %v828_v19 = vadd.f32 %v824_v3, %v790_v60  ;;  %v829_v8 = vadd.f32 %v825_v15, %v791_v61 }
 0x12b   :  { %v830_v47 = vadd.f32 %v826_v10, %v792_v24  ;;  %v831_v7 = vadd.f32 %v827_v11, %v793_v25  ;;  %v835_v26 = vpop.permute.xlu1 %834 }
 0x12c   :  { %v841_v16 = vsel %vm68_vm0, %v835_v26, %v837_v27  ;;  %v842_v17 = vsel %vm68_vm0, %v833_v0, %v835_v26 }
 0x12d   :  { %v849_v9 = vrot.slane %v842_v17, %v1303_v6  ;;  %v853_v14 = vrot.slane %v841_v16, %v1303_v6  ;;  %v865_v18 = vpop.permute.xlu0 %864 }
 0x12f   :  { %v867_v12 = vmul.f32 %v865_v18, %v849_v9  ;;  %v868_v5 = vmul.f32 %v865_v18, %v853_v14  ;;  %v839_v20 = vpop.permute.xlu1 %838 }
 0x130   :  { %v840_v13 = vsel %vm68_vm0, %v837_v27, %v839_v20  ;;  %v843_v50 = vsel %vm68_vm0, %v839_v20, %v833_v0 }
 0x131   :  { %v871_v21 = vadd.f32 %v867_v12, %v828_v19  ;;  %v872_v22 = vadd.f32 %v868_v5, %v829_v8  ;;  %v857_v23 = vrot.slane %v840_v13, %v1303_v6  ;;  %v861_v28 = vrot.slane %v843_v50, %v1303_v6  ;;  %v878_v29 = vpop.permute.xlu0 %877 }
 0x133   :  { %v869_v30 = vmul.f32 %v865_v18, %v857_v23  ;;  %v870_v31 = vmul.f32 %v865_v18, %v861_v28  ;;  %v876_v32 = vpop.permute.xlu1 %875 }
 0x134   :  { %v885_v34 = vsel %vm112_vm1, %v876_v32, %v878_v29 }
 0x135   :  { %v873_v33 = vadd.f32 %v869_v30, %v830_v47  ;;  %v874_v35 = vadd.f32 %v870_v31, %v831_v7  ;;  %v892_v36 = vrot.slane %v885_v34, %v1303_v6  ;;  %v880_v37 = vpop.permute.xlu0 %879 }
 0x136   :  { %v884_v39 = vsel %vm112_vm1, %v878_v29, %v880_v37 }
 0x137   :  { %v896_v41 = vrot.slane %v884_v39, %v1303_v6  ;;  %v908_v42 = vpop.permute.xlu1 %907 }
 0x138   :  { %v910_v44 = vmul.f32 %v908_v42, %v892_v36 }
 0x139   :  { %v911_v40 = vmul.f32 %v908_v42, %v896_v41  ;;  %v951_v43 = vpop.permute.xlu0 %950 }
 0x13a   :  { %v914_v48 = vadd.f32 %v910_v44, %v871_v21 }
 0x13b   :  { %v915_v45 = vadd.f32 %v911_v40, %v872_v22  ;;  %v882_v38 = vpop.permute.xlu1 %881 }
 0x13c   :  { %v883_v49 = vsel %vm112_vm1, %v880_v37, %v882_v38  ;;  %v886_v51 = vsel %vm112_vm1, %v882_v38, %v876_v32 }
 0x13d   :  { %v900_v52 = vrot.slane %v883_v49, %v1303_v6  ;;  %v904_v53 = vrot.slane %v886_v51, %v1303_v6  ;;  %v921_v54 = vpop.permute.xlu0 %920 }
 0x13f   :  { %v912_v55 = vmul.f32 %v908_v42, %v900_v52  ;;  %v913_v56 = vmul.f32 %v908_v42, %v904_v53  ;;  %v919_v57 = vpop.permute.xlu1 %918 }
 0x140   :  { %v928_v58 = vsel %vm156_vm2, %v919_v57, %v921_v54 }
 0x141   :  { %v916_v59 = vadd.f32 %v912_v55, %v873_v33  ;;  %v917_v60 = vadd.f32 %v913_v56, %v874_v35  ;;  %v935_v61 = vrot.slane %v928_v58, %v1303_v6  ;;  %v925_v62 = vpop.permute.xlu0 %924 }
 0x142   :  { %v929_v63 = vsel %vm156_vm2, %v925_v62, %v919_v57 }
 0x143   :  { %v953_v0 = vmul.f32 %v951_v43, %v935_v61  ;;  %v947_v1 = vrot.slane %v929_v63, %v1303_v6  ;;  %v923_v2 = vpop.permute.xlu1 %922 }
 0x144   :  { %v926_v4 = vsel %vm156_vm2, %v923_v2, %v925_v62  ;;  %v927_v10 = vsel %vm156_vm2, %v921_v54, %v923_v2 }
 0x145   :  { %v957_v11 = vadd.f32 %v953_v0, %v914_v48  ;;  %v956_v24 = vmul.f32 %v951_v43, %v947_v1  ;;  %v939_v25 = vrot.slane %v927_v10, %v1303_v6  ;;  %v943_v27 = vrot.slane %v926_v4, %v1303_v6  ;;  %v962_v3 = vpop.permute.xlu0 %961 }
 0x147   :  { %v960_v15 = vadd.f32 %v956_v24, %v917_v60  ;;  %v954_v47 = vmul.f32 %v951_v43, %v939_v25  ;;  %v955_v7 = vmul.f32 %v951_v43, %v943_v27  ;;  %v994_v26 = vpop.permute.xlu1 %993 }
 0x149   :  { %v958_v16 = vadd.f32 %v954_v47, %v915_v45  ;;  %v959_v17 = vadd.f32 %v955_v7, %v916_v59  ;;  %v966_v9 = vpop.permute.xlu0 %965 }
 0x14b   :  { %v964_v14 = vpop.permute.xlu1 %963 }
 0x14c   :  { %v970_v18 = vsel %vm200_vm3, %v964_v14, %v966_v9  ;;  %v971_v19 = vsel %vm200_vm3, %v962_v3, %v964_v14 }
 0x14d   :  { %v978_v8 = vrot.slane %v971_v19, %v1303_v6  ;;  %v982_v12 = vrot.slane %v970_v18, %v1303_v6  ;;  %v1037_v5 = vpop.permute.xlu0 %1036 }
 0x14f   :  { %v996_v20 = vmul.f32 %v994_v26, %v978_v8  ;;  %v997_v13 = vmul.f32 %v994_v26, %v982_v12  ;;  %v968_v50 = vpop.permute.xlu1 %967 }
 0x150   :  { %v969_v21 = vsel %vm200_vm3, %v966_v9, %v968_v50  ;;  %v972_v22 = vsel %vm200_vm3, %v968_v50, %v962_v3 }
 0x151   :  { %v1000_v23 = vadd.f32 %v996_v20, %v957_v11  ;;  %v1001_v28 = vadd.f32 %v997_v13, %v958_v16  ;;  %v986_v29 = vrot.slane %v969_v21, %v1303_v6  ;;  %v990_v30 = vrot.slane %v972_v22, %v1303_v6  ;;  %v1007_v31 = vpop.permute.xlu0 %1006 }
 0x153   :  { %v998_v32 = vmul.f32 %v994_v26, %v986_v29  ;;  %v999_v34 = vmul.f32 %v994_v26, %v990_v30  ;;  %v1005_v33 = vpop.permute.xlu1 %1004 }
 0x154   :  { %v1014_v35 = vsel %vm244_vm4, %v1005_v33, %v1007_v31 }
 0x155   :  { %v1002_v36 = vadd.f32 %v998_v32, %v959_v17  ;;  %v1003_v37 = vadd.f32 %v999_v34, %v960_v15  ;;  %v1021_v39 = vrot.slane %v1014_v35, %v1303_v6  ;;  %v1011_v41 = vpop.permute.xlu0 %1010 }
 0x156   :  { %v1015_v42 = vsel %vm244_vm4, %v1011_v41, %v1005_v33 }
 0x157   :  { %v1039_v44 = vmul.f32 %v1037_v5, %v1021_v39  ;;  %v1033_v40 = vrot.slane %v1015_v42, %v1303_v6  ;;  %v1009_v43 = vpop.permute.xlu1 %1008 }
 0x158   :  { %v1012_v48 = vsel %vm244_vm4, %v1009_v43, %v1011_v41  ;;  %v1013_v45 = vsel %vm244_vm4, %v1007_v31, %v1009_v43 }
 0x159   :  { %v1043_v38 = vadd.f32 %v1039_v44, %v1000_v23  ;;  %v1042_v49 = vmul.f32 %v1037_v5, %v1033_v40  ;;  %v1025_v51 = vrot.slane %v1013_v45, %v1303_v6  ;;  %v1029_v52 = vrot.slane %v1012_v48, %v1303_v6  ;;  %v1048_v53 = vpop.permute.xlu0 %1047 }
 0x15b   :  { %v1046_v54 = vadd.f32 %v1042_v49, %v1003_v37  ;;  %v1040_v55 = vmul.f32 %v1037_v5, %v1025_v51  ;;  %v1041_v56 = vmul.f32 %v1037_v5, %v1029_v52  ;;  %v1080_v57 = vpop.permute.xlu1 %1079 }
 0x15d   :  { %v1044_v58 = vadd.f32 %v1040_v55, %v1001_v28  ;;  %v1045_v59 = vadd.f32 %v1041_v56, %v1002_v36  ;;  %v1052_v60 = vpop.permute.xlu0 %1051 }
 0x15f   :  { %v1050_v61 = vpop.permute.xlu1 %1049 }
 0x160   :  { %v1056_v62 = vsel %vm288_vm5, %v1050_v61, %v1052_v60  ;;  %v1057_v63 = vsel %vm288_vm5, %v1048_v53, %v1050_v61 }
 0x161   :  { %v1064_v0 = vrot.slane %v1057_v63, %v1303_v6  ;;  %v1068_v1 = vrot.slane %v1056_v62, %v1303_v6  ;;  %v1123_v2 = vpop.permute.xlu0 %1122 }
 0x163   :  { %v1082_v4 = vmul.f32 %v1080_v57, %v1064_v0  ;;  %v1083_v10 = vmul.f32 %v1080_v57, %v1068_v1  ;;  %v1054_v11 = vpop.permute.xlu1 %1053 }
 0x164   :  { %v1055_v24 = vsel %vm288_vm5, %v1052_v60, %v1054_v11  ;;  %v1058_v25 = vsel %vm288_vm5, %v1054_v11, %v1048_v53 }
 0x165   :  { %v1086_v27 = vadd.f32 %v1082_v4, %v1043_v38  ;;  %v1087_v3 = vadd.f32 %v1083_v10, %v1044_v58  ;;  %v1072_v15 = vrot.slane %v1055_v24, %v1303_v6  ;;  %v1076_v47 = vrot.slane %v1058_v25, %v1303_v6  ;;  %v1093_v7 = vpop.permute.xlu0 %1092 }
 0x167   :  { %v1084_v26 = vmul.f32 %v1080_v57, %v1072_v15  ;;  %v1085_v16 = vmul.f32 %v1080_v57, %v1076_v47  ;;  %v1091_v17 = vpop.permute.xlu1 %1090 }
 0x168   :  { %v1100_v9 = vsel %vm332_vm6, %v1091_v17, %v1093_v7 }
 0x169   :  { %v1088_v14 = vadd.f32 %v1084_v26, %v1045_v59  ;;  %v1089_v18 = vadd.f32 %v1085_v16, %v1046_v54  ;;  %v1107_v19 = vrot.slane %v1100_v9, %v1303_v6  ;;  %v1097_v8 = vpop.permute.xlu0 %1096 }
 0x16a   :  { %v1101_v12 = vsel %vm332_vm6, %v1097_v8, %v1091_v17 }
 0x16b   :  { %v1125_v5 = vmul.f32 %v1123_v2, %v1107_v19  ;;  %v1119_v20 = vrot.slane %v1101_v12, %v1303_v6  ;;  %v1095_v13 = vpop.permute.xlu1 %1094 }
 0x16c   :  { %v1098_v50 = vsel %vm332_vm6, %v1095_v13, %v1097_v8  ;;  %v1099_v21 = vsel %vm332_vm6, %v1093_v7, %v1095_v13 }
 0x16d   :  { %v1129_v22 = vadd.f32 %v1125_v5, %v1086_v27  ;;  %v1128_v23 = vmul.f32 %v1123_v2, %v1119_v20  ;;  %v1111_v28 = vrot.slane %v1099_v21, %v1303_v6  ;;  %v1115_v29 = vrot.slane %v1098_v50, %v1303_v6  ;;  %v1134_v30 = vpop.permute.xlu0 %1133 }
 0x16f   :  { %v1132_v31 = vadd.f32 %v1128_v23, %v1089_v18  ;;  %v1126_v32 = vmul.f32 %v1123_v2, %v1111_v28  ;;  %v1127_v34 = vmul.f32 %v1123_v2, %v1115_v29  ;;  %v1166_v33 = vpop.permute.xlu1 %1165 }
 0x171   :  { %v1130_v35 = vadd.f32 %v1126_v32, %v1087_v3  ;;  %v1131_v36 = vadd.f32 %v1127_v34, %v1088_v14  ;;  %v1138_v37 = vpop.permute.xlu0 %1137 }
 0x173   :  { %v1136_v39 = vpop.permute.xlu1 %1135 }
 0x174   :  { %v1143_v41 = vsel %vm376_vm7, %v1134_v30, %v1136_v39  ;;  %v1142_v42 = vsel %vm376_vm7, %v1136_v39, %v1138_v37 }
 0x175   :  { %v1150_v44 = vrot.slane %v1143_v41, %v1303_v6  ;;  %v1154_v40 = vrot.slane %v1142_v42, %v1303_v6 }
 0x177   :  { %v1168_v43 = vmul.f32 %v1166_v33, %v1150_v44  ;;  %v1169_v48 = vmul.f32 %v1166_v33, %v1154_v40  ;;  %v1140_v45 = vpop.permute.xlu1 %1139 }
 0x178   :  { %v1141_v38 = vsel %vm376_vm7, %v1138_v37, %v1140_v45  ;;  %v1144_v49 = vsel %vm376_vm7, %v1140_v45, %v1134_v30 }
 0x179   :  { %v1172_v51 = vadd.f32 %v1168_v43, %v1129_v22  ;;  %v1173_v52 = vadd.f32 %v1169_v48, %v1130_v35  ;;  %v1158_v53 = vrot.slane %v1141_v38, %v1303_v6  ;;  %v1162_v54 = vrot.slane %v1144_v49, %v1303_v6 }
 0x17b   :  { %1176 = vst [vmem:[#allocation2] sm:$0xff] %v1172_v51  ;;  %1177 = vst [vmem:[#allocation2 + $0x8] sm:$0xff] %v1173_v52  ;;  %v1170_v55 = vmul.f32 %v1166_v33, %v1158_v53  ;;  %v1171_v56 = vmul.f32 %v1166_v33, %v1162_v54 }
 0x17d   :  { %v1174_v57 = vadd.f32 %v1170_v55, %v1131_v36  ;;  %v1175_v58 = vadd.f32 %v1171_v56, %v1132_v31 }
 0x17f   :  { %1179 = vst [vmem:[#allocation2 + $0x10] sm:$0xff] %v1174_v57  ;;  %1180 = vst [vmem:[#allocation2 + $0x18] sm:$0xff] %v1175_v58 }
 0x180   :  { %1250 = shalt.err (!%p1247_p4)
}
 0x181   :  { %s1271_s4 = smov 256   ;;  %s1272_s6 = smov 16  }
 0x182   :  { %1192 = dma.vmem_to_hbm [thread:$0]  %s1187_s8, 512, %s1976_s3, [#allocation3], %s1271_s4, %s1271_s4, %s1272_s6  }
 0x183   :  { %1259 = dma.done.wait [#allocation3], 512  }
 0x184   :  { %1260 = vsyncadd [#allocation3], 4294966784 }
 0x185   :  { %1196 = vsyncpa [#allocation3], 1 }

</bundles_post_ra>
